<compile_context>
chip_gen: v7x
topology: tpu7x:2x2x1
jax: 0.10.0
libtpu: 0.0.40
codegen_flags: <defaults>
</compile_context>

<pallas_src>
import functools

import jax
import jax.numpy as jnp
from jax.experimental import pallas as pl
from jax.experimental.pallas import tpu as pltpu


def _round_up(n, m):
    return ((n + m - 1) // m) * m


# --------------------------------------------------------------------------- #
# Kernel body
# --------------------------------------------------------------------------- #
def _mlp_kernel(x_ref, w1_ref, b1_ref, w2_ref, b2_ref, w3_ref, b3_ref, o_ref,
                *, lane_dense):
    # fc1 + ReLU (MXU, f32 accumulation).  Cast x to the MXU compute dtype
    # here (keeps x f32 in HBM; no wrapper-side astype pass).
    x = x_ref[...].astype(w1_ref.dtype)
    h1 = jnp.dot(x, w1_ref[...], preferred_element_type=jnp.float32)
    h1 = jnp.maximum(h1 + b1_ref[...], 0.0)

    # fc2 + ReLU.
    h2 = jnp.dot(h1.astype(w2_ref.dtype), w2_ref[...],
                 preferred_element_type=jnp.float32)
    h2 = jnp.maximum(h2 + b2_ref[...], 0.0)

    # fc3 (N=1): VPU broadcast-multiply + lane reduce (w3 arrives as (1,16)).
    out = jnp.sum(h2 * w3_ref[...], axis=-1, keepdims=True) + b3_ref[...]  # (TB,1)

    if lane_dense:
        tb = out.shape[0]
        # Row r of this tile -> o_ref[r // 128, r % 128]  (lane-dense store).
        o_ref[...] = out.reshape(tb // 128, 128).astype(o_ref.dtype)
    else:
        o_ref[...] = out.astype(o_ref.dtype)


# --------------------------------------------------------------------------- #
# pallas_call builder (shared by the real path and the lowering probe)
# --------------------------------------------------------------------------- #
def _forward(x, w1, b1, w2, b2, w3r, b3, *, TB, lane_dense, x_buffers):
    B = x.shape[0]
    grid_n = pl.cdiv(B, TB)

    if lane_dense:
        assert TB % 128 == 0
        out_shape = jax.ShapeDtypeStruct((grid_n * (TB // 128), 128), jnp.float32)
        out_spec = pl.BlockSpec((TB // 128, 128), lambda i: (i, 0))
    else:
        out_shape = jax.ShapeDtypeStruct((grid_n * TB, 1), jnp.float32)
        out_spec = pl.BlockSpec((TB, 1), lambda i: (i, 0))

    x_spec_kwargs = {}
    if x_buffers != 2:  # deepen the x pipeline only when explicitly requested
        x_spec_kwargs["pipeline_mode"] = pl.Buffered(x_buffers)
    x_spec = pl.BlockSpec((TB, 64), lambda i: (i, 0), **x_spec_kwargs)

    # Constant block index => one HBM->VMEM DMA, resident across all tiles.
    resident = lambda a: pl.BlockSpec(a.shape, lambda i: (0, 0))

    param_bytes = sum(int(a.size) * a.dtype.itemsize
                      for a in (w1, b1, w2, b2, w3r, b3))
    cost = pl.CostEstimate(
        flops=2 * B * (64 * 32 + 32 * 16 + 16 * 1),
        transcendentals=0,
        bytes_accessed=B * (64 * x.dtype.itemsize + 4) + param_bytes,
    )

    kernel = functools.partial(_mlp_kernel, lane_dense=lane_dense)
    return pl.pallas_call(
        kernel,
        out_shape=out_shape,
        grid=(grid_n,),
        in_specs=[x_spec,
                  resident(w1), resident(b1),
                  resident(w2), resident(b2),
                  resident(w3r), resident(b3)],
        out_specs=out_spec,
        compiler_params=pltpu.CompilerParams(
            dimension_semantics=("parallel",),
            vmem_limit_bytes=32 * 1024 * 1024),
        cost_estimate=cost,
    )(x, w1, b1, w2, b2, w3r, b3)


@functools.lru_cache(maxsize=None)
def _lane_dense_supported():
    """Probe (AOT compile only) whether the (TB,1)->(TB//128,128) relayout
    lowers on this Mosaic/TPU; fall back to the proven column layout if not."""
    try:
        x = jnp.zeros((2048, 64), jnp.float32)
        w1 = jnp.zeros((64, 32), jnp.float32)
        b1 = jnp.zeros((1, 32), jnp.float32)
        w2 = jnp.zeros((32, 16), jnp.float32)
        b2 = jnp.zeros((1, 16), jnp.float32)
        w3 = jnp.zeros((1, 16), jnp.float32)
        b3 = jnp.zeros((1, 1), jnp.float32)
        fn = functools.partial(_forward, TB=1024, lane_dense=True, x_buffers=2)
        jax.jit(fn).lower(x, w1, b1, w2, b2, w3, b3).compile()
        return True
    except Exception:
        return False


# --------------------------------------------------------------------------- #
# Public wrapper
# --------------------------------------------------------------------------- #
def predict_mlp(x, params, *, block_rows=None, compute_dtype=jnp.float32,
                x_buffers=2, lane_dense=None):
    """x: (B, 64).  params: dict of w1,b1,w2,b2,w3,b3 in the x @ W convention.

    compute_dtype: dtype fed to the MXU for fc1/fc2 (f32 or bf16; x itself is
    streamed from HBM in its stored dtype and cast in-kernel).
    """
    B, d_in = x.shape
    assert d_in == 64
    compute_dtype = jnp.dtype(compute_dtype)
    if block_rows is None:
        block_rows = 16384 if compute_dtype == jnp.dtype(jnp.bfloat16) else 8192
    if lane_dense is None:
        lane_dense = _lane_dense_supported()

    w1 = params["w1"].astype(compute_dtype)
    w2 = params["w2"].astype(compute_dtype)
    b1 = params["b1"].astype(jnp.float32).reshape(1, 32)
    b2 = params["b2"].astype(jnp.float32).reshape(1, 16)
    w3r = params["w3"].astype(jnp.float32).reshape(1, 16)   # (1, 16) for VPU fc3
    b3 = params["b3"].astype(jnp.float32).reshape(1, 1)

    if B < 1024:
        # Small batch: one tile.  Pad to a multiple of 128 (tiny copy) so the
        # lane-dense out block is legal; padded rows are sliced off below.
        B_pad = _round_up(B, 128)
        x_in = jnp.pad(x, ((0, B_pad - B), (0, 0))) if B_pad != B else x
        TB = B_pad
    else:
        # Streaming path: NO padding / copying of x.  The ragged last tile is
        # handled by Pallas's clamped boundary DMA; its garbage rows produce
        # garbage outputs that are sliced off below.
        x_in = x
        tb_req = _round_up(block_rows, 1024)          # out block (TB//128,128) needs TB%1024==0
        tb_cap_batch = (B // 1024) * 1024             # keep block <= array
        tb_cap_cores = max(1024, ((B // 4) // 1024) * 1024)  # >=4 steps for megacore
        TB = max(1024, min(tb_req, tb_cap_batch, tb_cap_cores))

    out = _forward(x_in, w1, b1, w2, b2, w3r, b3,
                   TB=TB, lane_dense=lane_dense, x_buffers=x_buffers)
    # Both layouts flatten to row order; drop padded/garbage tail rows.
    return out.reshape(-1)[:B].reshape(B, 1)


# --------------------------------------------------------------------------- #
# Synthetic params + pure-JAX reference
# --------------------------------------------------------------------------- #
def init_params(key):
    """Deterministic synthetic params matching nn.Linear(64,32)/(32,16)/(16,1),
    stored as (in, out) for the x @ W convention."""
    ks = jax.random.split(key, 6)

    def uniform_fanin(k, shape, fan_in):
        bound = 1.0 / jnp.sqrt(fan_in)
        return jax.random.uniform(k, shape, jnp.float32, -bound, bound)

    return {
        "w1": uniform_fanin(ks[0], (64, 32), 64),
        "b1": uniform_fanin(ks[1], (1, 32), 64),
        "w2": uniform_fanin(ks[2], (32, 16), 32),
        "b2": uniform_fanin(ks[3], (1, 16), 32),
        "w3": uniform_fanin(ks[4], (16, 1), 16),
        "b3": uniform_fanin(ks[5], (1, 1), 16),
    }


def predict_mlp_ref(x, p, compute_dtype=jnp.float32):
    """Pure-JAX reference.  compute_dtype emulates the kernel's MXU input
    rounding (inputs rounded to compute_dtype, f32 accumulation).  HIGHEST
    precision so the reference itself is full f32."""
    hi = jax.lax.Precision.HIGHEST
    q = lambda a: a.astype(compute_dtype).astype(jnp.float32)
    h = jnp.maximum(jnp.dot(q(x), q(p["w1"]), precision=hi) + p["b1"].reshape(1, -1), 0.0)
    h = jnp.maximum(jnp.dot(q(h), q(p["w2"]), precision=hi) + p["b2"].reshape(1, -1), 0.0)
    return jnp.dot(h, p["w3"], precision=hi) + p["b3"].reshape(1, -1)


if __name__ == "__main__":
    key = jax.random.PRNGKey(0)
    kx1, kx2, kp = jax.random.split(key, 3)
    params = init_params(kp)

    # Tolerances are loose-ish because the MXU decomposes f32 matmuls into
    # bf16 passes; structural bugs (row order / tail handling) would be O(0.1).
    tol = dict(atol=1e-3, rtol=1e-3)

    # 1) Small batch (single-tile path).
    x_small = jax.random.normal(kx1, (8, 64), jnp.float32)
    out_small = jax.block_until_ready(predict_mlp(x_small, params))
    ref_small = predict_mlp_ref(x_small, params)
    assert out_small.shape == (8, 1)
    assert jnp.allclose(out_small, ref_small, **tol)

    # 2) Multi-tile streaming path with a ragged tail (no wrapper-side pad of x).
    x_big = jax.random.normal(kx2, (2100, 64), jnp.float32)
    out_big = jax.block_until_ready(predict_mlp(x_big, params, block_rows=1024))
    ref_big = predict_mlp_ref(x_big, params)
    assert out_big.shape == (2100, 1)
    assert jnp.allclose(out_big, ref_big, **tol)

    # 3) bf16 MXU-input path (f32 accumulation; x stays f32 in HBM, cast in-kernel).
    out_bf16 = jax.block_until_ready(
        predict_mlp(x_big, params, block_rows=1024, compute_dtype=jnp.bfloat16))
    ref_bf16 = predict_mlp_ref(x_big, params, compute_dtype=jnp.bfloat16)
    assert jnp.allclose(out_bf16, ref_bf16, atol=5e-3, rtol=5e-3)

    print("KERNEL_OK")
</pallas_src>

<mosaic_0001>
module attributes {stable_mosaic.version = 11 : i64} {
  func.func @_mlp_kernel(%arg0: i32, %arg1: memref<128x64xf32, #tpu.memory_space<vmem>>, %arg2: memref<64x32xf32, #tpu.memory_space<vmem>>, %arg3: memref<1x32xf32, #tpu.memory_space<vmem>>, %arg4: memref<32x16xf32, #tpu.memory_space<vmem>>, %arg5: memref<1x16xf32, #tpu.memory_space<vmem>>, %arg6: memref<1x16xf32, #tpu.memory_space<vmem>>, %arg7: memref<1x1xf32, #tpu.memory_space<vmem>>, %arg8: memref<128x1xf32, #tpu.memory_space<vmem>>) attributes {dimension_semantics = [#tpu.dimension_semantics<parallel>], iteration_bounds = array<i64: 1>, scalar_prefetch = 0 : i64, scratch_operands = 0 : i64, tpu.core_type = #tpu.core_type<tc>, window_params = [{transform_indices = @transform_0, window_bounds = array<i64: 128, 64>}, {pipeline_mode = #tpu.pipeline_mode<synchronous>, transform_indices = @transform_1, window_bounds = array<i64: 64, 32>}, {pipeline_mode = #tpu.pipeline_mode<synchronous>, transform_indices = @transform_2, window_bounds = array<i64: 1, 32>}, {pipeline_mode = #tpu.pipeline_mode<synchronous>, transform_indices = @transform_3, window_bounds = array<i64: 32, 16>}, {pipeline_mode = #tpu.pipeline_mode<synchronous>, transform_indices = @transform_4, window_bounds = array<i64: 1, 16>}, {pipeline_mode = #tpu.pipeline_mode<synchronous>, transform_indices = @transform_5, window_bounds = array<i64: 1, 16>}, {pipeline_mode = #tpu.pipeline_mode<synchronous>, transform_indices = @transform_6, window_bounds = array<i64: 1, 1>}, {transform_indices = @transform_7, window_bounds = array<i64: 128, 1>}]} {
    %c0 = arith.constant 0 : index
    %c0_0 = arith.constant 0 : index
    %0 = vector.load %arg1[%c0, %c0_0] : memref<128x64xf32, #tpu.memory_space<vmem>>, vector<128x64xf32>
    %c0_1 = arith.constant 0 : index
    %c0_2 = arith.constant 0 : index
    %1 = vector.load %arg2[%c0_1, %c0_2] : memref<64x32xf32, #tpu.memory_space<vmem>>, vector<64x32xf32>
    %cst = arith.constant dense<0.000000e+00> : vector<128x32xf32>
    %2 = tpu.matmul %0, %1, %cst {dimension_numbers = #tpu.dot_dimension_numbers<[1], [0], [0], [1], [0, 0, 1, 1], [], []>} : vector<128x64xf32>, vector<64x32xf32>, vector<128x32xf32> -> vector<128x32xf32>
    %c0_3 = arith.constant 0 : index
    %c0_4 = arith.constant 0 : index
    %3 = vector.load %arg3[%c0_3, %c0_4] : memref<1x32xf32, #tpu.memory_space<vmem>>, vector<1x32xf32>
    %4 = vector.broadcast %3 : vector<1x32xf32> to vector<128x32xf32>
    %5 = arith.addf %2, %4 : vector<128x32xf32>
    %cst_5 = arith.constant 0.000000e+00 : f32
    %6 = vector.broadcast %cst_5 : f32 to vector<128x32xf32>
    %7 = arith.maximumf %5, %6 : vector<128x32xf32>
    %c0_6 = arith.constant 0 : index
    %c0_7 = arith.constant 0 : index
    %8 = vector.load %arg4[%c0_6, %c0_7] : memref<32x16xf32, #tpu.memory_space<vmem>>, vector<32x16xf32>
    %cst_8 = arith.constant dense<0.000000e+00> : vector<128x16xf32>
    %9 = tpu.matmul %7, %8, %cst_8 {dimension_numbers = #tpu.dot_dimension_numbers<[1], [0], [0], [1], [0, 0, 1, 1], [], []>} : vector<128x32xf32>, vector<32x16xf32>, vector<128x16xf32> -> vector<128x16xf32>
    %c0_9 = arith.constant 0 : index
    %c0_10 = arith.constant 0 : index
    %10 = vector.load %arg5[%c0_9, %c0_10] : memref<1x16xf32, #tpu.memory_space<vmem>>, vector<1x16xf32>
    %11 = vector.broadcast %10 : vector<1x16xf32> to vector<128x16xf32>
    %12 = arith.addf %9, %11 : vector<128x16xf32>
    %cst_11 = arith.constant 0.000000e+00 : f32
    %13 = vector.broadcast %cst_11 : f32 to vector<128x16xf32>
    %14 = arith.maximumf %12, %13 : vector<128x16xf32>
    %c0_12 = arith.constant 0 : index
    %c0_13 = arith.constant 0 : index
    %15 = vector.load %arg6[%c0_12, %c0_13] : memref<1x16xf32, #tpu.memory_space<vmem>>, vector<1x16xf32>
    %16 = vector.broadcast %15 : vector<1x16xf32> to vector<128x16xf32>
    %17 = arith.mulf %14, %16 : vector<128x16xf32>
    %cst_14 = arith.constant dense<0.000000e+00> : vector<128xf32>
    %18 = vector.multi_reduction <add>, %17, %cst_14 [1] : vector<128x16xf32> to vector<128xf32>
    %19 = vector.shape_cast %18 : vector<128xf32> to vector<128x1xf32>
    %c0_15 = arith.constant 0 : index
    %c0_16 = arith.constant 0 : index
    %20 = vector.load %arg7[%c0_15, %c0_16] : memref<1x1xf32, #tpu.memory_space<vmem>>, vector<1x1xf32>
    %21 = vector.broadcast %20 : vector<1x1xf32> to vector<128x1xf32>
    %22 = arith.addf %19, %21 : vector<128x1xf32>
    %c0_17 = arith.constant 0 : index
    %c0_18 = arith.constant 0 : index
    %23 = vector.load %arg8[%c0_17, %c0_18] : memref<128x1xf32, #tpu.memory_space<vmem>>, vector<128x1xf32>
    tpu.vector_store %arg8[%c0_17, %c0_18], %22 {strides = array<i32>} : memref<128x1xf32, #tpu.memory_space<vmem>>, vector<128x1xf32>,
    return
  }
  func.func @transform_0(%arg0: i32) -> (i32, i32) {
    %c0_i32 = arith.constant 0 : i32
    %c0_i32_0 = arith.constant 0 : i32
    return %arg0, %c0_i32 : i32, i32
  }
  func.func @transform_1(%arg0: i32) -> (i32, i32) {
    %c0_i32 = arith.constant 0 : i32
    %c0_i32_0 = arith.constant 0 : i32
    %c0_i32_1 = arith.constant 0 : i32
    return %c0_i32, %c0_i32_0 : i32, i32
  }
  func.func @transform_2(%arg0: i32) -> (i32, i32) {
    %c0_i32 = arith.constant 0 : i32
    %c0_i32_0 = arith.constant 0 : i32
    %c0_i32_1 = arith.constant 0 : i32
    return %c0_i32, %c0_i32_0 : i32, i32
  }
  func.func @transform_3(%arg0: i32) -> (i32, i32) {
    %c0_i32 = arith.constant 0 : i32
    %c0_i32_0 = arith.constant 0 : i32
    %c0_i32_1 = arith.constant 0 : i32
    return %c0_i32, %c0_i32_0 : i32, i32
  }
  func.func @transform_4(%arg0: i32) -> (i32, i32) {
    %c0_i32 = arith.constant 0 : i32
    %c0_i32_0 = arith.constant 0 : i32
    %c0_i32_1 = arith.constant 0 : i32
    return %c0_i32, %c0_i32_0 : i32, i32
  }
  func.func @transform_5(%arg0: i32) -> (i32, i32) {
    %c0_i32 = arith.constant 0 : i32
    %c0_i32_0 = arith.constant 0 : i32
    %c0_i32_1 = arith.constant 0 : i32
    return %c0_i32, %c0_i32_0 : i32, i32
  }
  func.func @transform_6(%arg0: i32) -> (i32, i32) {
    %c0_i32 = arith.constant 0 : i32
    %c0_i32_0 = arith.constant 0 : i32
    %c0_i32_1 = arith.constant 0 : i32
    return %c0_i32, %c0_i32_0 : i32, i32
  }
  func.func @transform_7(%arg0: i32) -> (i32, i32) {
    %c0_i32 = arith.constant 0 : i32
    %c0_i32_0 = arith.constant 0 : i32
    return %arg0, %c0_i32 : i32, i32
  }
}

</mosaic_0001>

<bundles_post_ra>
// kernel: tpu_custom_call.1
= control target key start
LH: loop header
LB: loop body
LE: loop exit
PB: predicated region body
PF: predicated region fallthrough
CT: control target
= control target key end

     0   :  { %vm59_vm0 = vcmask 523264   ;;  %vm280_vm1 = vcmask 261120   ;;  %vm513_vm2 = vcmask 130048   ;;  %vm585_vm3 = vcmask 7168   ;;  %s1066_s1 = inlined_call_operand.vmem [shape: f32[64,32], index: 1, kind: input, shape index: {}]   ;;  %s1067_s0 = inlined_call_operand.vmem [shape: f32[128,64], index: 0, kind: input, shape index: {}]   ;;  %s1068_s3 = inlined_call_operand.vmem [shape: f32[32,16], index: 3, kind: input, shape index: {}]   ;;  %s1069_s2 = inlined_call_operand.vmem [shape: f32[1,32], index: 2, kind: input, shape index: {}]   ;;  %s1070_s6 = inlined_call_operand.<no memory space> [shape: f32[1,1], index: 6, kind: input, shape index: {}]   ;;  %s1071_s4 = inlined_call_operand.vmem [shape: f32[1,16], index: 4, kind: input, shape index: {}]   ;;  %s1072_s5 = inlined_call_operand.vmem [shape: f32[1,16], index: 5, kind: input, shape index: {}]   ;;  %s1073_s7 = inlined_call_operand.vmem [shape: f32[128,1], index: 7, kind: output, shape index: {}]  }
   0x1   :  { %v44_v0 = vld [vmem:[%s1066_s1] sm:$0xff]  ;;  %v45_v1 = vld [vmem:[%s1066_s1 + $0x8] sm:$0xff]  ;;  %v46_v2 = vld [vmem:[%s1066_s1 + $0x10] sm:$0xff] }
   0x2   :  { %v758_v3 = vpack.c.bf16 %v45_v1, %v44_v0  ;;  %v47_v4 = vld [vmem:[%s1066_s1 + $0x18] sm:$0xff]  ;;  %v48_v6 = vld [vmem:[%s1066_s1 + $0x20] sm:$0xff]  ;;  %v49_v7 = vld [vmem:[%s1066_s1 + $0x28] sm:$0xff] }
   0x3   :  { %v762_v5 = vpack.c.bf16 %v47_v4, %v46_v2  ;;  %v28_v8 = vld [vmem:[%s1067_s0] sm:$0xff]  ;;  %v766_v9 = vpack.c.bf16 %v49_v7, %v48_v6  ;;  %v50_v10 = vld [vmem:[%s1066_s1 + $0x30] sm:$0xff]  ;;  %v51_v11 = vld [vmem:[%s1066_s1 + $0x38] sm:$0xff] }
   0x4   :  { %759 = vmatprep.subr.bf16.mxu0 %v758_v3  ;;  %702 = vmatprep.mubr.msk.f32.mxu0 %vm59_vm0, %v28_v8  ;;  %v269_v12 = vld [vmem:[%s1068_s3] sm:$0xff]  ;;  %v270_v13 = vld [vmem:[%s1068_s3 + $0x8] sm:$0xff]  ;;  %v770_v14 = vpack.c.bf16 %v51_v11, %v50_v10  ;;  %v30_v17 = vld [vmem:[%s1067_s0 + $0x10] sm:$0xff] }
   0x5   :  { %761 = vmatpush3.bf16.msra.mxu0 %v758_v3  ;;  %v774_v15 = vpack.c.bf16 %v270_v13, %v269_v12  ;;  %v29_v16 = vld [vmem:[%s1067_s0 + $0x8] sm:$0xff]  ;;  %v31_v18 = vld [vmem:[%s1067_s0 + $0x18] sm:$0xff]  ;;  %v32_v19 = vld [vmem:[%s1067_s0 + $0x20] sm:$0xff] }
   0x6   :  { %763 = vmatprep.subr.bf16.mxu0 %v762_v5  ;;  %v33_v20 = vld [vmem:[%s1067_s0 + $0x28] sm:$0xff]  ;;  %v34_v21 = vld [vmem:[%s1067_s0 + $0x30] sm:$0xff]  ;;  %v35_v22 = vld [vmem:[%s1067_s0 + $0x38] sm:$0xff] }
   0x7   :  { %775 = vmatprep.subr.bf16.mxu1 %v774_v15  ;;  %v36_v23 = vld [vmem:[%s1067_s0 + $0x40] sm:$0xff]  ;;  %v37_v24 = vld [vmem:[%s1067_s0 + $0x48] sm:$0xff]  ;;  %v38_v25 = vld [vmem:[%s1067_s0 + $0x50] sm:$0xff] }
   0x8   :  { %777 = vmatpush3.bf16.msra.mxu1 %v774_v15  ;;  %v39_v26 = vld [vmem:[%s1067_s0 + $0x58] sm:$0xff]  ;;  %v40_v27 = vld [vmem:[%s1067_s0 + $0x60] sm:$0xff]  ;;  %v41_v28 = vld [vmem:[%s1067_s0 + $0x68] sm:$0xff] }
   0x9   :  { %765 = vmatpush3.bf16.msra.mxu0 %v762_v5  ;;  %v42_v29 = vld [vmem:[%s1067_s0 + $0x70] sm:$0xff]  ;;  %v43_v30 = vld [vmem:[%s1067_s0 + $0x78] sm:$0xff]  ;;  %v606_v34 = vld [vmem:[%s1069_s2] ss:$0 sm:$0xff] }
   0xa   :  { %767 = vmatprep.subr.bf16.mxu0 %v766_v9  ;;  %v271_v31 = vld [vmem:[%s1068_s3 + $0x10] sm:$0xff]  ;;  %v272_v32 = vld [vmem:[%s1068_s3 + $0x18] sm:$0xff] }
   0xb   :  { %v778_v33 = vpack.c.bf16 %v272_v32, %v271_v31 }
   0xd   :  { %769 = vmatpush3.bf16.msra.mxu0 %v766_v9  ;;  %779 = vmatprep.subr.bf16.mxu1 %v778_v33 }
   0xe   :  { %771 = vmatprep.subr.bf16.mxu0 %v770_v14  ;;  %781 = vmatpush3.bf16.msra.mxu1 %v778_v33 }
  0x11   :  { %773 = vmatpush3.bf16.msra.mxu0 %v770_v14 }
  0x14   :  { %703 = vmatmul.mubr.msk.f32.vlgmr.msra.gmra.mrb[0].mxu0 %vm59_vm0, %v29_v16 }
  0x15   :  { %705 = vmatprep.mubr.msk.f32.mxu0 %vm59_vm0, %v30_v17 }
  0x18   :  { %706 = vmatmul.mubr.msk.f32.gmra.mrb[2].mxu0 %vm59_vm0, %v31_v18 }
  0x19   :  { %708 = vmatprep.mubr.msk.f32.mxu0 %vm59_vm0, %v32_v19  ;;  %v12_v19 = vstv %s1070_s6 }
  0x1a   :  { %13 = vst [vmem:[#allocation2] sm:$0x1] %v12_v19 }
  0x1c   :  { %709 = vmatmul.mubr.msk.f32.gmra.mrb[4].mxu0 %vm59_vm0, %v33_v20  ;;  %v947_v20 = vld [vmem:[%s1071_s4] ss:$0 sm:$0xff] }
  0x1d   :  { %711 = vmatprep.mubr.msk.f32.mxu0 %vm59_vm0, %v34_v21 }
  0x20   :  { %712 = vmatmul.mubr.msk.f32.gmra.mrb[6].mxu0 %vm59_vm0, %v35_v22 }
  0x21   :  { %714 = vmatprep.mubr.msk.f32.mxu0 %vm59_vm0, %v36_v23 }
  0x24   :  { %715 = vmatmul.mubr.msk.f32.gmra.mrb[8].mxu0 %vm59_vm0, %v37_v24 }
  0x25   :  { %717 = vmatprep.mubr.msk.f32.mxu0 %vm59_vm0, %v38_v25  ;;  %v954_v25 = vld [vmem:[%s1072_s5] ss:$0 sm:$0xff] }
  0x28   :  { %718 = vmatmul.mubr.msk.f32.gmra.mrb[10].mxu0 %vm59_vm0, %v39_v26 }
  0x29   :  { %720 = vmatprep.mubr.msk.f32.mxu0 %vm59_vm0, %v40_v27 }
  0x2c   :  { %721 = vmatmul.mubr.msk.f32.gmra.mrb[12].mxu0 %vm59_vm0, %v41_v28 }
  0x2d   :  { %723 = vmatprep.mubr.msk.f32.mxu0 %vm59_vm0, %v42_v29 }
  0x30   :  { %724 = vmatmul.mubr.msk.f32.gmra.mrb[14].mxu0 %vm59_vm0, %v43_v30 }
  0xe7   :  { %v704_v35 = vpop.f32.mrb[0].mxu0 }
  0xe8   :  { %v180_v36 = vadd.f32 %v704_v35, %v606_v34  ;;  %v174_v37 = vpop.f32.mrb[1].mxu0 }
  0xe9   :  { %v175_v38 = vadd.f32 %v606_v34, %v174_v37 }
  0xea   :  { %v254_v41 = vmax.f32 %v180_v36, 0.0 }
  0xeb   :  { %v253_v39 = vmax.f32 %v175_v38, 0.0  ;;  %v707_v40 = vpop.f32.mrb[2].mxu0 }
  0xec   :  { %v190_v42 = vadd.f32 %v707_v40, %v606_v34  ;;  %v184_v43 = vpop.f32.mrb[3].mxu0 }
  0xed   :  { %v185_v44 = vadd.f32 %v606_v34, %v184_v43  ;;  %734 = vmatprep.mubr.msk.f32.mxu1 %vm280_vm1, %v253_v39 }
  0xee   :  { %735 = vmatmul.mubr.msk.f32.vlgmr.msra.gmra.mrb[0].mxu1 %vm280_vm1, %v254_v41  ;;  %v256_v47 = vmax.f32 %v190_v42, 0.0 }
  0xef   :  { %v255_v45 = vmax.f32 %v185_v44, 0.0  ;;  %v710_v46 = vpop.f32.mrb[4].mxu0 }
  0xf0   :  { %v200_v48 = vadd.f32 %v710_v46, %v606_v34  ;;  %v194_v49 = vpop.f32.mrb[5].mxu0 }
  0xf1   :  { %v195_v50 = vadd.f32 %v606_v34, %v194_v49  ;;  %737 = vmatprep.mubr.msk.f32.mxu1 %vm280_vm1, %v255_v45 }
  0xf2   :  { %v258_v51 = vmax.f32 %v200_v48, 0.0  ;;  %738 = vmatmul.mubr.msk.f32.gmra.mrb[2].mxu1 %vm280_vm1, %v256_v47 }
  0xf3   :  { %v257_v52 = vmax.f32 %v195_v50, 0.0  ;;  %v713_v53 = vpop.f32.mrb[6].mxu0 }
  0xf4   :  { %v210_v54 = vadd.f32 %v713_v53, %v606_v34  ;;  %v204_v55 = vpop.f32.mrb[7].mxu0 }
  0xf5   :  { %v205_v56 = vadd.f32 %v606_v34, %v204_v55  ;;  %740 = vmatprep.mubr.msk.f32.mxu1 %vm280_vm1, %v257_v52 }
  0xf6   :  { %v260_v57 = vmax.f32 %v210_v54, 0.0  ;;  %741 = vmatmul.mubr.msk.f32.gmra.mrb[4].mxu1 %vm280_vm1, %v258_v51 }
  0xf7   :  { %v259_v58 = vmax.f32 %v205_v56, 0.0  ;;  %v716_v59 = vpop.f32.mrb[8].mxu0 }
  0xf8   :  { %v220_v60 = vadd.f32 %v716_v59, %v606_v34  ;;  %v214_v61 = vpop.f32.mrb[9].mxu0 }
  0xf9   :  { %v215_v62 = vadd.f32 %v606_v34, %v214_v61  ;;  %743 = vmatprep.mubr.msk.f32.mxu1 %vm280_vm1, %v259_v58 }
  0xfa   :  { %v262_v63 = vmax.f32 %v220_v60, 0.0  ;;  %744 = vmatmul.mubr.msk.f32.gmra.mrb[6].mxu1 %vm280_vm1, %v260_v57 }
  0xfb   :  { %v261_v0 = vmax.f32 %v215_v62, 0.0  ;;  %v719_v1 = vpop.f32.mrb[10].mxu0 }
  0xfc   :  { %v230_v2 = vadd.f32 %v719_v1, %v606_v34  ;;  %v224_v3 = vpop.f32.mrb[11].mxu0 }
  0xfd   :  { %v225_v4 = vadd.f32 %v606_v34, %v224_v3  ;;  %746 = vmatprep.mubr.msk.f32.mxu1 %vm280_vm1, %v261_v0 }
  0xfe   :  { %v264_v5 = vmax.f32 %v230_v2, 0.0  ;;  %747 = vmatmul.mubr.msk.f32.gmra.mrb[8].mxu1 %vm280_vm1, %v262_v63 }
  0xff   :  { %v263_v6 = vmax.f32 %v225_v4, 0.0  ;;  %v722_v7 = vpop.f32.mrb[12].mxu0 }
 0x100   :  { %v240_v8 = vadd.f32 %v722_v7, %v606_v34  ;;  %v234_v9 = vpop.f32.mrb[13].mxu0 }
 0x101   :  { %v235_v10 = vadd.f32 %v606_v34, %v234_v9  ;;  %749 = vmatprep.mubr.msk.f32.mxu1 %vm280_vm1, %v263_v6 }
 0x102   :  { %v266_v11 = vmax.f32 %v240_v8, 0.0  ;;  %750 = vmatmul.mubr.msk.f32.gmra.mrb[10].mxu1 %vm280_vm1, %v264_v5 }
 0x103   :  { %v265_v12 = vmax.f32 %v235_v10, 0.0  ;;  %v725_v13 = vpop.f32.mrb[14].mxu0 }
 0x104   :  { %v250_v14 = vadd.f32 %v725_v13, %v606_v34  ;;  %v244_v15 = vpop.f32.mrb[15].mxu0 }
 0x105   :  { %v245_v16 = vadd.f32 %v606_v34, %v244_v15  ;;  %752 = vmatprep.mubr.msk.f32.mxu1 %vm280_vm1, %v265_v12 }
 0x106   :  { %v268_v17 = vmax.f32 %v250_v14, 0.0  ;;  %753 = vmatmul.mubr.msk.f32.gmra.mrb[12].mxu1 %vm280_vm1, %v266_v11 }
 0x107   :  { %v267_v18 = vmax.f32 %v245_v16, 0.0 }
 0x109   :  { %755 = vmatprep.mubr.msk.f32.mxu1 %vm280_vm1, %v267_v18 }
 0x10a   :  { %756 = vmatmul.mubr.msk.f32.gmra.mrb[14].mxu1 %vm280_vm1, %v268_v17 }
 0x1c1   :  { %v736_v21 = vpop.f32.mrb[0].mxu1 }
 0x1c2   :  { %v401_v22 = vadd.f32 %v736_v21, %v947_v20  ;;  %v395_v23 = vpop.f32.mrb[1].mxu1 }
 0x1c3   :  { %v396_v24 = vadd.f32 %v947_v20, %v395_v23 }
 0x1c4   :  { %v475_v26 = vmax.f32 %v401_v22, 0.0 }
 0x1c5   :  { %v474_v27 = vmax.f32 %v396_v24, 0.0  ;;  %v739_v28 = vpop.f32.mrb[2].mxu1 }
 0x1c6   :  { %v411_v29 = vadd.f32 %v739_v28, %v947_v20  ;;  %v405_v30 = vpop.f32.mrb[3].mxu1  ;;  %v498_v31 = vmul.f32 %v954_v25, %v475_v26 }
 0x1c7   :  { %v406_v32 = vadd.f32 %v947_v20, %v405_v30  ;;  %v497_v35 = vmul.f32 %v954_v25, %v474_v27 }
 0x1c8   :  { %v477_v33 = vmax.f32 %v411_v29, 0.0  ;;  %v517_v34 = vsel %vm513_vm2, %v498_v31, 0.0 }
 0x1c9   :  { %v476_v36 = vmax.f32 %v406_v32, 0.0  ;;  %518 = vadd.xlane.f32.xlu0 %v517_v34  ;;  %v742_v37 = vpop.f32.mrb[4].mxu1  ;;  %v514_v44 = vsel %vm513_vm2, %v497_v35, 0.0 }
 0x1ca   :  { %v421_v38 = vadd.f32 %v742_v37, %v947_v20  ;;  %v415_v39 = vpop.f32.mrb[5].mxu1  ;;  %v500_v40 = vmul.f32 %v954_v25, %v477_v33 }
 0x1cb   :  { %v416_v41 = vadd.f32 %v947_v20, %v415_v39  ;;  %v499_v45 = vmul.f32 %v954_v25, %v476_v36  ;;  %v641_v39 = vld [vmem:[#allocation2] ss:$0 sm:$0xff] }
 0x1cc   :  { %v479_v42 = vmax.f32 %v421_v38, 0.0  ;;  %v523_v43 = vsel %vm513_vm2, %v500_v40, 0.0 }
 0x1cd   :  { %v478_v46 = vmax.f32 %v416_v41, 0.0  ;;  %524 = vadd.xlane.f32.xlu1 %v523_v43  ;;  %v745_v47 = vpop.f32.mrb[6].mxu1  ;;  %515 = vadd.xlane.f32.xlu0 %v514_v44  ;;  %v520_v53 = vsel %vm513_vm2, %v499_v45, 0.0 }
 0x1ce   :  { %v431_v48 = vadd.f32 %v745_v47, %v947_v20  ;;  %v425_v49 = vpop.f32.mrb[7].mxu1  ;;  %v502_v54 = vmul.f32 %v954_v25, %v479_v42 }
 0x1cf   :  { %v426_v50 = vadd.f32 %v947_v20, %v425_v49  ;;  %v501_v51 = vmul.f32 %v954_v25, %v478_v46 }
 0x1d0   :  { %v481_v52 = vmax.f32 %v431_v48, 0.0  ;;  %v529_v63 = vsel %vm513_vm2, %v502_v54, 0.0 }
 0x1d1   :  { %v480_v55 = vmax.f32 %v426_v50, 0.0  ;;  %v748_v56 = vpop.f32.mrb[8].mxu1  ;;  %521 = vadd.xlane.f32.xlu1 %v520_v53  ;;  %v526_v57 = vsel %vm513_vm2, %v501_v51, 0.0 }
 0x1d2   :  { %v441_v58 = vadd.f32 %v748_v56, %v947_v20  ;;  %v435_v59 = vpop.f32.mrb[9].mxu1  ;;  %527 = vadd.xlane.f32.xlu0 %v526_v57  ;;  %v504_v0 = vmul.f32 %v954_v25, %v481_v52 }
 0x1d3   :  { %v436_v60 = vadd.f32 %v947_v20, %v435_v59  ;;  %v503_v61 = vmul.f32 %v954_v25, %v480_v55 }
 0x1d4   :  { %v483_v62 = vmax.f32 %v441_v58, 0.0  ;;  %v535_v9 = vsel %vm513_vm2, %v504_v0, 0.0 }
 0x1d5   :  { %v482_v1 = vmax.f32 %v436_v60, 0.0  ;;  %v751_v2 = vpop.f32.mrb[10].mxu1  ;;  %530 = vadd.xlane.f32.xlu1 %v529_v63  ;;  %v532_v3 = vsel %vm513_vm2, %v503_v61, 0.0 }
 0x1d6   :  { %v451_v4 = vadd.f32 %v751_v2, %v947_v20  ;;  %v445_v5 = vpop.f32.mrb[11].mxu1  ;;  %533 = vadd.xlane.f32.xlu0 %v532_v3  ;;  %v506_v10 = vmul.f32 %v954_v25, %v483_v62 }
 0x1d7   :  { %v446_v6 = vadd.f32 %v947_v20, %v445_v5  ;;  %v505_v7 = vmul.f32 %v954_v25, %v482_v1 }
 0x1d8   :  { %v485_v8 = vmax.f32 %v451_v4, 0.0  ;;  %v541_v19 = vsel %vm513_vm2, %v506_v10, 0.0 }
 0x1d9   :  { %v484_v11 = vmax.f32 %v446_v6, 0.0  ;;  %v754_v12 = vpop.f32.mrb[12].mxu1  ;;  %536 = vadd.xlane.f32.xlu1 %v535_v9  ;;  %v538_v13 = vsel %vm513_vm2, %v505_v7, 0.0 }
 0x1da   :  { %v461_v14 = vadd.f32 %v754_v12, %v947_v20  ;;  %v455_v15 = vpop.f32.mrb[13].mxu1  ;;  %539 = vadd.xlane.f32.xlu0 %v538_v13  ;;  %v508_v21 = vmul.f32 %v954_v25, %v485_v8 }
 0x1db   :  { %v456_v16 = vadd.f32 %v947_v20, %v455_v15  ;;  %v507_v17 = vmul.f32 %v954_v25, %v484_v11 }
 0x1dc   :  { %v487_v18 = vmax.f32 %v461_v14, 0.0  ;;  %v547_v31 = vsel %vm513_vm2, %v508_v21, 0.0 }
 0x1dd   :  { %v486_v22 = vmax.f32 %v456_v16, 0.0  ;;  %v757_v23 = vpop.f32.mrb[14].mxu1  ;;  %542 = vadd.xlane.f32.xlu1 %v541_v19  ;;  %v544_v24 = vsel %vm513_vm2, %v507_v17, 0.0 }
 0x1de   :  { %v471_v26 = vadd.f32 %v757_v23, %v947_v20  ;;  %v465_v27 = vpop.f32.mrb[15].mxu1  ;;  %545 = vadd.xlane.f32.xlu0 %v544_v24  ;;  %v510_v32 = vmul.f32 %v954_v25, %v487_v18 }
 0x1df   :  { %v466_v28 = vadd.f32 %v947_v20, %v465_v27  ;;  %v509_v29 = vmul.f32 %v954_v25, %v486_v22 }
 0x1e0   :  { %v489_v30 = vmax.f32 %v471_v26, 0.0  ;;  %v553_v36 = vsel %vm513_vm2, %v510_v32, 0.0 }
 0x1e1   :  { %v488_v33 = vmax.f32 %v466_v28, 0.0  ;;  %548 = vadd.xlane.f32.xlu1 %v547_v31  ;;  %v550_v34 = vsel %vm513_vm2, %v509_v29, 0.0 }
 0x1e2   :  { %551 = vadd.xlane.f32.xlu0 %v550_v34  ;;  %v512_v37 = vmul.f32 %v954_v25, %v489_v30 }
 0x1e3   :  { %v511_v35 = vmul.f32 %v954_v25, %v488_v33 }
 0x1e4   :  { %v559_v38 = vsel %vm513_vm2, %v512_v37, 0.0 }
 0x1e5   :  { %554 = vadd.xlane.f32.xlu1 %v553_v36  ;;  %v556_v20 = vsel %vm513_vm2, %v511_v35, 0.0 }
 0x1e6   :  { %557 = vadd.xlane.f32.xlu0 %v556_v20 }
 0x1e9   :  { %560 = vadd.xlane.f32.xlu1 %v559_v38 }
 0x256   :  { %v519_v40 = vpop.xlane.xlu0 %518 }
 0x257   :  { %v570_v41 = vadd.f32 %v641_v39, %v519_v40 }
 0x259   :  { %587 = vst.msk [vmem:[%s1073_s7 + $0x8] sm:$0xff] %vm585_vm3, %v570_v41 }
 0x25a   :  { %v525_v42 = vpop.xlane.xlu1 %524  ;;  %v516_v43 = vpop.xlane.xlu0 %515 }
 0x25b   :  { %v572_v44 = vadd.f32 %v641_v39, %v525_v42  ;;  %v569_v25 = vadd.f32 %v641_v39, %v516_v43 }
 0x25d   :  { %589 = vst.msk [vmem:[%s1073_s7 + $0x18] sm:$0xff] %vm585_vm3, %v572_v44  ;;  %586 = vst.msk [vmem:[%s1073_s7] sm:$0xff] %vm585_vm3, %v569_v25 }
 0x25e   :  { %v522_v45 = vpop.xlane.xlu1 %521 }
 0x25f   :  { %v571_v46 = vadd.f32 %v641_v39, %v522_v45  ;;  %v528_v47 = vpop.xlane.xlu0 %527 }
 0x260   :  { %v573_v48 = vadd.f32 %v641_v39, %v528_v47 }
 0x261   :  { %588 = vst.msk [vmem:[%s1073_s7 + $0x10] sm:$0xff] %vm585_vm3, %v571_v46 }
 0x262   :  { %590 = vst.msk [vmem:[%s1073_s7 + $0x20] sm:$0xff] %vm585_vm3, %v573_v48  ;;  %v531_v49 = vpop.xlane.xlu1 %530 }
 0x263   :  { %v574_v50 = vadd.f32 %v641_v39, %v531_v49  ;;  %v534_v51 = vpop.xlane.xlu0 %533 }
 0x264   :  { %v575_v52 = vadd.f32 %v641_v39, %v534_v51 }
 0x265   :  { %591 = vst.msk [vmem:[%s1073_s7 + $0x28] sm:$0xff] %vm585_vm3, %v574_v50 }
 0x266   :  { %592 = vst.msk [vmem:[%s1073_s7 + $0x30] sm:$0xff] %vm585_vm3, %v575_v52  ;;  %v537_v53 = vpop.xlane.xlu1 %536 }
 0x267   :  { %v576_v54 = vadd.f32 %v641_v39, %v537_v53  ;;  %v540_v55 = vpop.xlane.xlu0 %539 }
 0x268   :  { %v577_v56 = vadd.f32 %v641_v39, %v540_v55 }
 0x269   :  { %593 = vst.msk [vmem:[%s1073_s7 + $0x38] sm:$0xff] %vm585_vm3, %v576_v54 }
 0x26a   :  { %594 = vst.msk [vmem:[%s1073_s7 + $0x40] sm:$0xff] %vm585_vm3, %v577_v56  ;;  %v543_v57 = vpop.xlane.xlu1 %542 }
 0x26b   :  { %v578_v58 = vadd.f32 %v641_v39, %v543_v57  ;;  %v546_v59 = vpop.xlane.xlu0 %545 }
 0x26c   :  { %v579_v60 = vadd.f32 %v641_v39, %v546_v59 }
 0x26d   :  { %595 = vst.msk [vmem:[%s1073_s7 + $0x48] sm:$0xff] %vm585_vm3, %v578_v58 }
 0x26e   :  { %596 = vst.msk [vmem:[%s1073_s7 + $0x50] sm:$0xff] %vm585_vm3, %v579_v60  ;;  %v549_v61 = vpop.xlane.xlu1 %548 }
 0x26f   :  { %v580_v62 = vadd.f32 %v641_v39, %v549_v61  ;;  %v552_v63 = vpop.xlane.xlu0 %551 }
 0x270   :  { %v581_v0 = vadd.f32 %v641_v39, %v552_v63 }
 0x271   :  { %597 = vst.msk [vmem:[%s1073_s7 + $0x58] sm:$0xff] %vm585_vm3, %v580_v62 }
 0x272   :  { %598 = vst.msk [vmem:[%s1073_s7 + $0x60] sm:$0xff] %vm585_vm3, %v581_v0  ;;  %v555_v1 = vpop.xlane.xlu1 %554 }
 0x273   :  { %v582_v2 = vadd.f32 %v641_v39, %v555_v1  ;;  %v558_v3 = vpop.xlane.xlu0 %557 }
 0x274   :  { %v583_v4 = vadd.f32 %v641_v39, %v558_v3 }
 0x275   :  { %599 = vst.msk [vmem:[%s1073_s7 + $0x68] sm:$0xff] %vm585_vm3, %v582_v2 }
 0x276   :  { %600 = vst.msk [vmem:[%s1073_s7 + $0x70] sm:$0xff] %vm585_vm3, %v583_v4  ;;  %v561_v5 = vpop.xlane.xlu1 %560 }
 0x277   :  { %v584_v6 = vadd.f32 %v641_v39, %v561_v5 }
 0x279   :  { %601 = vst.msk [vmem:[%s1073_s7 + $0x78] sm:$0xff] %vm585_vm3, %v584_v6 }

</bundles_post_ra>
